<compile_context>
chip_gen: v5e
topology: v5e:2x2
jax: 0.10.0
libtpu: 0.0.40
codegen_flags: <defaults>
</compile_context>

<pallas_src>
import functools

import jax
import jax.numpy as jnp
from jax import lax
from jax.experimental import pallas as pl
from jax.experimental.pallas import tpu as pltpu

GAMMA = 1e-10          # matches BPRLoss.__init__ self.gamma
LANES = 128
SUBLANES = 8
MAX_TILE_ROWS = 8192   # 8192 x 128 x 4B = 4 MiB per f32 input block
NCORES_MAX = 2         # v7x megacore; sequential (harmless) on v5e / v6e
VMEM_LIMIT_BYTES = 32 * 1024 * 1024


def _bpr_kernel(p_ref, n_ref, o_ref, acc_ref, *,
                n_valid, tiles_per_core, tile_rows):
    """One (tile_rows, 128) tile: accumulate log(gamma + sigmoid(p - n))."""
    c = pl.program_id(0)          # core / parallel axis
    i = pl.program_id(1)          # reduction axis (arbitrary)

    @pl.when(i == 0)
    def _init():
        acc_ref[...] = jnp.zeros_like(acc_ref)

    # Stream native dtype, compute in f32 (VPU + EUP elementwise hot path).
    p = p_ref[...].astype(jnp.float32)
    n = n_ref[...].astype(jnp.float32)
    x = p - n
    # sigmoid(x) == 0.5*tanh(0.5*x) + 0.5  ->  exactly one EUP op (tanh);
    # log is the second EUP op.  gamma added afterwards so a saturated tanh
    # (x <~ -17) still hits the 1e-10 floor instead of log(0).
    sig = 0.5 * jnp.tanh(0.5 * x) + 0.5
    log_term = jnp.log(sig + jnp.float32(GAMMA))

    tile_elems = tile_rows * LANES
    # Unclamped global element offset of this logical tile (the BlockSpec
    # index_map clamps the *DMA* index; masking below uses the logical one).
    start = (c * tiles_per_core + i) * tile_elems

    @pl.when(start <= n_valid - tile_elems)
    def _full_tile():
        # Elementwise accumulate: one independent vadd per loaded vreg.
        acc_ref[...] += log_term

    @pl.when(start > n_valid - tile_elems)
    def _ragged_tile():
        # Only tiles containing padding / OOB garbage pay for the mask.
        row = lax.broadcasted_iota(jnp.int32, (tile_rows, LANES), 0)
        lane = lax.broadcasted_iota(jnp.int32, (tile_rows, LANES), 1)
        local = row * LANES + lane
        mask = local < (n_valid - start)          # all-False for duplicate tiles
        acc_ref[...] += jnp.where(mask, log_term, jnp.float32(0.0))

    @pl.when(i == pl.num_programs(1) - 1)
    def _finalize():
        # Once-per-core log-depth fold of the wide accumulator (<=8-way adds).
        acc = acc_ref[...]
        r = tile_rows
        while r % SUBLANES == 0 and r > SUBLANES:
            r //= SUBLANES
            acc = acc.reshape(SUBLANES, r, LANES).sum(axis=0)
        o_ref[0] = jnp.sum(acc, axis=0, keepdims=True)   # lane-dense (1, 128)


def bpr_loss(p_score, n_score):
    """Pallas-TPU implementation of BPRLoss.forward. Returns a float32 scalar."""
    assert p_score.shape == n_score.shape
    n_elems = int(p_score.size)
    assert 0 < n_elems < 2**31   # in-kernel index math is int32

    flat_p = jnp.ravel(p_score)   # contiguous ravel/reshape = free bitcast
    flat_n = jnp.ravel(n_score)

    rows = pl.cdiv(n_elems, LANES)
    pad = rows * LANES - n_elems
    if pad:  # only non-128-multiple callers pay this copy (see TODO above)
        flat_p = jnp.pad(flat_p, (0, pad))
        flat_n = jnp.pad(flat_n, (0, pad))

    p2 = flat_p.reshape(rows, LANES)
    n2 = flat_n.reshape(rows, LANES)

    # Static tiling plan (all Python ints).  Edge blocks + in-kernel masking
    # mean no row padding is ever needed.
    tile_rows = min(rows, MAX_TILE_ROWS)          # either full-dim or mult of 8
    n_tiles = pl.cdiv(rows, tile_rows)
    ncores = NCORES_MAX if n_tiles >= NCORES_MAX else 1
    tiles_per_core = pl.cdiv(n_tiles, ncores)

    def in_map(c, i):
        # Clamp so a trailing (fully-masked) tile on core 1 never DMAs an
        # entirely out-of-bounds block when n_tiles is odd.
        return (jnp.minimum(c * tiles_per_core + i, n_tiles - 1), 0)

    in_spec = pl.BlockSpec((tile_rows, LANES), in_map)

    partials = pl.pallas_call(
        functools.partial(_bpr_kernel, n_valid=n_elems,
                          tiles_per_core=tiles_per_core, tile_rows=tile_rows),
        out_shape=jax.ShapeDtypeStruct((ncores, 1, LANES), jnp.float32),
        grid_spec=pltpu.PrefetchScalarGridSpec(
            num_scalar_prefetch=0,
            grid=(ncores, tiles_per_core),
            in_specs=[in_spec, in_spec],
            out_specs=pl.BlockSpec((1, 1, LANES), lambda c, i: (c, 0, 0)),
            scratch_shapes=[pltpu.VMEM((tile_rows, LANES), jnp.float32)],
        ),
        compiler_params=pltpu.CompilerParams(
            dimension_semantics=("parallel", "arbitrary"),
            vmem_limit_bytes=VMEM_LIMIT_BYTES,
        ),
    )(p2, n2)

    # Tiny final fold (<= 2*128 elements), sign flip and mean normalization.
    return -jnp.sum(partials) / jnp.float32(n_elems)


def bpr_loss_ref(p_score, n_score):
    """Pure-JAX reference for correctness checking."""
    return jnp.mean(
        -jnp.log(GAMMA + jax.nn.sigmoid(p_score.astype(jnp.float32)
                                        - n_score.astype(jnp.float32)))
    )


if __name__ == "__main__":
    key = jax.random.PRNGKey(0)
    k1, k2, k3, k4 = jax.random.split(key, 4)

    # Typical BPR usage: 1-D positive / negative score vectors (batch = 300,
    # deliberately not a multiple of 128 to exercise the ragged-tail mask).
    batch = 300
    p_score = jax.random.normal(k1, (batch,), dtype=jnp.float32)
    n_score = jax.random.normal(k2, (batch,), dtype=jnp.float32)

    loss = jax.block_until_ready(bpr_loss(p_score, n_score))
    ref = bpr_loss_ref(p_score, n_score)
    assert jnp.allclose(loss, ref, rtol=1e-4, atol=1e-6), (loss, ref)

    # 2-D bf16 scores: exercises flattening + native-dtype streaming with
    # in-kernel upcast to f32.
    p_bf = jax.random.normal(k3, (7, 53), dtype=jnp.bfloat16)
    n_bf = jax.random.normal(k4, (7, 53), dtype=jnp.bfloat16)
    loss_bf = jax.block_until_ready(bpr_loss(p_bf, n_bf))
    ref_bf = bpr_loss_ref(p_bf, n_bf)
    assert jnp.allclose(loss_bf, ref_bf, rtol=1e-4, atol=1e-6), (loss_bf, ref_bf)

    print("KERNEL_OK")
</pallas_src>

<mosaic_0001>
module attributes {stable_mosaic.version = 11 : i64} {
  func.func @_bpr_kernel(%arg0: i32, %arg1: i32, %arg2: memref<3x128xf32, #tpu.memory_space<vmem>>, %arg3: memref<3x128xf32, #tpu.memory_space<vmem>>, %arg4: memref<1x1x128xf32, #tpu.memory_space<vmem>>, %arg5: memref<3x128xf32, #tpu.memory_space<vmem>>) attributes {dimension_semantics = [#tpu.dimension_semantics<parallel>, #tpu.dimension_semantics<arbitrary>], iteration_bounds = array<i64: 1, 1>, scalar_prefetch = 0 : i64, scratch_operands = 1 : i64, tpu.core_type = #tpu.core_type<tc>, window_params = [{transform_indices = @transform_0, window_bounds = array<i64: 3, 128>}, {transform_indices = @transform_1, window_bounds = array<i64: 3, 128>}, {transform_indices = @transform_2, window_bounds = array<i64: 1, 1, 128>}]} {
    %c0_i32 = arith.constant 0 : i32
    %0 = arith.cmpi eq, %arg1, %c0_i32 : i32
    %1 = arith.extui %0 : i1 to i32
    %c0_i32_0 = arith.constant 0 : i32
    %2 = arith.cmpi ne, %1, %c0_i32_0 : i32
    scf.if %2 {
      %cst_12 = arith.constant 0.000000e+00 : f32
      %28 = vector.broadcast %cst_12 : f32 to vector<3x128xf32>
      %c0_13 = arith.constant 0 : index
      %c0_14 = arith.constant 0 : index
      %29 = vector.load %arg5[%c0_13, %c0_14] : memref<3x128xf32, #tpu.memory_space<vmem>>, vector<3x128xf32>
      tpu.vector_store %arg5[%c0_13, %c0_14], %28 {strides = array<i32>} : memref<3x128xf32, #tpu.memory_space<vmem>>, vector<3x128xf32>,
    } else {
    }
    %c0 = arith.constant 0 : index
    %c0_1 = arith.constant 0 : index
    %3 = vector.load %arg2[%c0, %c0_1] : memref<3x128xf32, #tpu.memory_space<vmem>>, vector<3x128xf32>
    %c0_2 = arith.constant 0 : index
    %c0_3 = arith.constant 0 : index
    %4 = vector.load %arg3[%c0_2, %c0_3] : memref<3x128xf32, #tpu.memory_space<vmem>>, vector<3x128xf32>
    %5 = arith.subf %3, %4 : vector<3x128xf32>
    %cst = arith.constant 5.000000e-01 : f32
    %6 = vector.broadcast %cst : f32 to vector<3x128xf32>
    %7 = arith.mulf %6, %5 : vector<3x128xf32>
    %8 = math.tanh %7 : vector<3x128xf32>
    %cst_4 = arith.constant 5.000000e-01 : f32
    %9 = vector.broadcast %cst_4 : f32 to vector<3x128xf32>
    %10 = arith.mulf %9, %8 : vector<3x128xf32>
    %cst_5 = arith.constant 5.000000e-01 : f32
    %11 = vector.broadcast %cst_5 : f32 to vector<3x128xf32>
    %12 = arith.addf %10, %11 : vector<3x128xf32>
    %cst_6 = arith.constant 1.000000e-10 : f32
    %13 = vector.broadcast %cst_6 : f32 to vector<3x128xf32>
    %14 = arith.addf %12, %13 : vector<3x128xf32>
    %15 = math.log %14 : vector<3x128xf32>
    %c1_i32 = arith.constant 1 : i32
    %16 = arith.muli %arg0, %c1_i32 : i32
    %17 = arith.addi %16, %arg1 : i32
    %c384_i32 = arith.constant 384 : i32
    %18 = arith.muli %17, %c384_i32 : i32
    %c-84_i32 = arith.constant -84 : i32
    %19 = arith.cmpi sle, %18, %c-84_i32 : i32
    %20 = arith.extui %19 : i1 to i32
    %c0_i32_7 = arith.constant 0 : i32
    %21 = arith.cmpi ne, %20, %c0_i32_7 : i32
    scf.if %21 {
      %c0_12 = arith.constant 0 : index
      %c0_13 = arith.constant 0 : index
      %28 = vector.load %arg5[%c0_12, %c0_13] : memref<3x128xf32, #tpu.memory_space<vmem>>, vector<3x128xf32>
      %29 = arith.addf %28, %15 : vector<3x128xf32>
      %c0_14 = arith.constant 0 : index
      %c0_15 = arith.constant 0 : index
      %30 = vector.load %arg5[%c0_14, %c0_15] : memref<3x128xf32, #tpu.memory_space<vmem>>, vector<3x128xf32>
      tpu.vector_store %arg5[%c0_14, %c0_15], %29 {strides = array<i32>} : memref<3x128xf32, #tpu.memory_space<vmem>>, vector<3x128xf32>,
    } else {
    }
    %c-84_i32_8 = arith.constant -84 : i32
    %22 = arith.cmpi sgt, %18, %c-84_i32_8 : i32
    %23 = arith.extui %22 : i1 to i32
    %c0_i32_9 = arith.constant 0 : i32
    %24 = arith.cmpi ne, %23, %c0_i32_9 : i32
    scf.if %24 {
      %28 = tpu.iota {dimensions = array<i32: 0>} : vector<3x128xi32>
      %29 = tpu.iota {dimensions = array<i32: 1>} : vector<3x128xi32>
      %c128_i32 = arith.constant 128 : i32
      %30 = vector.broadcast %c128_i32 : i32 to vector<3x128xi32>
      %31 = arith.muli %28, %30 : vector<3x128xi32>
      %32 = arith.addi %31, %29 : vector<3x128xi32>
      %c300_i32 = arith.constant 300 : i32
      %33 = arith.subi %c300_i32, %18 : i32
      %34 = vector.broadcast %33 : i32 to vector<3x128xi32>
      %35 = arith.cmpi slt, %32, %34 : vector<3x128xi32>
      %c0_12 = arith.constant 0 : index
      %c0_13 = arith.constant 0 : index
      %36 = vector.load %arg5[%c0_12, %c0_13] : memref<3x128xf32, #tpu.memory_space<vmem>>, vector<3x128xf32>
      %cst_14 = arith.constant 0.000000e+00 : f32
      %37 = vector.broadcast %cst_14 : f32 to vector<3x128xf32>
      %38 = arith.select %35, %15, %37 : vector<3x128xi1>, vector<3x128xf32>
      %39 = arith.addf %36, %38 : vector<3x128xf32>
      %c0_15 = arith.constant 0 : index
      %c0_16 = arith.constant 0 : index
      %40 = vector.load %arg5[%c0_15, %c0_16] : memref<3x128xf32, #tpu.memory_space<vmem>>, vector<3x128xf32>
      tpu.vector_store %arg5[%c0_15, %c0_16], %39 {strides = array<i32>} : memref<3x128xf32, #tpu.memory_space<vmem>>, vector<3x128xf32>,
    } else {
    }
    %c0_i32_10 = arith.constant 0 : i32
    %25 = arith.cmpi eq, %arg1, %c0_i32_10 : i32
    %26 = arith.extui %25 : i1 to i32
    %c0_i32_11 = arith.constant 0 : i32
    %27 = arith.cmpi ne, %26, %c0_i32_11 : i32
    scf.if %27 {
      %c0_12 = arith.constant 0 : index
      %c0_13 = arith.constant 0 : index
      %28 = vector.load %arg5[%c0_12, %c0_13] : memref<3x128xf32, #tpu.memory_space<vmem>>, vector<3x128xf32>
      %cst_14 = arith.constant dense<0.000000e+00> : vector<128xf32>
      %29 = vector.multi_reduction <add>, %28, %cst_14 [0] : vector<3x128xf32> to vector<128xf32>
      %30 = vector.shape_cast %29 : vector<128xf32> to vector<1x128xf32>
      %c0_15 = arith.constant 0 : index
      %c0_16 = arith.constant 0 : index
      %c0_17 = arith.constant 0 : index
      %31 = vector.load %arg4[%c0_15, %c0_16, %c0_17] : memref<1x1x128xf32, #tpu.memory_space<vmem>>, vector<1x1x128xf32>
      %32 = vector.shape_cast %31 : vector<1x1x128xf32> to vector<1x128xf32>
      %33 = vector.shape_cast %30 : vector<1x128xf32> to vector<1x1x128xf32>
      tpu.vector_store %arg4[%c0_15, %c0_16, %c0_17], %33 {strides = array<i32>} : memref<1x1x128xf32, #tpu.memory_space<vmem>>, vector<1x1x128xf32>,
    } else {
    }
    return
  }
  func.func @transform_0(%arg0: i32, %arg1: i32) -> (i32, i32) {
    %c1_i32 = arith.constant 1 : i32
    %0 = arith.muli %arg0, %c1_i32 : i32
    %1 = arith.addi %0, %arg1 : i32
    %c0_i32 = arith.constant 0 : i32
    %2 = arith.minsi %1, %c0_i32 : i32
    %c0_i32_0 = arith.constant 0 : i32
    %c0_i32_1 = arith.constant 0 : i32
    return %2, %c0_i32_0 : i32, i32
  }
  func.func @transform_1(%arg0: i32, %arg1: i32) -> (i32, i32) {
    %c1_i32 = arith.constant 1 : i32
    %0 = arith.muli %arg0, %c1_i32 : i32
    %1 = arith.addi %0, %arg1 : i32
    %c0_i32 = arith.constant 0 : i32
    %2 = arith.minsi %1, %c0_i32 : i32
    %c0_i32_0 = arith.constant 0 : i32
    %c0_i32_1 = arith.constant 0 : i32
    return %2, %c0_i32_0 : i32, i32
  }
  func.func @transform_2(%arg0: i32, %arg1: i32) -> (i32, i32, i32) {
    %c0_i32 = arith.constant 0 : i32
    %c0_i32_0 = arith.constant 0 : i32
    %c0_i32_1 = arith.constant 0 : i32
    return %arg0, %c0_i32, %c0_i32_0 : i32, i32, i32
  }
}

</mosaic_0001>

<bundles_post_ra>
// kernel: tpu_custom_call.1
= control target key start
LH: loop header
LB: loop body
LE: loop exit
PB: predicated region body
PF: predicated region fallthrough
CT: control target
= control target key end

     0   :  { %7 = vsyncpa [#allocation4], 0  ;;  %s246_s0 = inlined_call_operand.hbm [shape: f32[3,128], index: 0, kind: input, shape index: {}]   ;;  %s247_s1 = inlined_call_operand.hbm [shape: f32[3,128], index: 1, kind: input, shape index: {}]   ;;  %s248_s2 = inlined_call_operand.hbm [shape: f32[1,1,128], index: 2, kind: output, shape index: {}]  }
   0x1   :  { %8 = vsyncpa [#allocation7], 0 }
   0x2   :  { %9 = vsyncpa [#allocation5], 0  ;;  %s20_s11 = sshll.u32 %s246_s0, 4  ;;  %s218_s12 = smov [#allocation3]   ;;  %s21_s11 = int_to_ptr.hbm [resolvable:$true] %s20_s11 }
   0x3   :  { %s22_s13 = sshll.u32 %s218_s12, 4  ;;  %s36_s16 = sshll.u32 %s247_s1, 4  ;;  %s23_s13 = int_to_ptr.vmem [resolvable:$true] %s22_s13  ;;  %s37_s16 = int_to_ptr.hbm [resolvable:$true] %s36_s16 }
   0x4   :  { %25 = dma.hbm_to_vmem [thread:$0]  %s21_s11, 64, %s23_s13, [#allocation4]  }
   0x5   :  { %s219_s17 = smov [#allocation6]  }
   0x6   :  { %s38_s18 = sshll.u32 %s219_s17, 4  ;;  %s39_s18 = int_to_ptr.vmem [resolvable:$true] %s38_s18 }
   0x7   :  { %41 = dma.hbm_to_vmem [thread:$0]  %s37_s16, 64, %s39_s18, [#allocation7]  }
   0x8   :  { %212 = dma.done.wait [#allocation4], 64  }
   0x9   :  { %213 = vsyncadd [#allocation4], 4294967232 }
   0xa   :  { %214 = dma.done.wait [#allocation7], 64  }
   0xb   :  { %215 = vsyncadd [#allocation7], 4294967232  ;;  %v220_v0 = vmov 0.0   ;;  %v61_v1 = vld [vmem:[#allocation3] sm:$0x7]  ;;  %v84_v5 = vlaneseq  ;;  %vm101_vm1 = vcmask 1042432  }
   0xc   :  { %60 = vst [vmem:[#allocation2] sm:$0x7] %v220_v0  ;;  %v62_v2 = vld [vmem:[#allocation6] sm:$0x7]  ;;  %s221_s0 = smov [#allocation8]   ;;  %s117_s21 = sshll.u32 %s248_s2, 4  ;;  %s118_s21 = int_to_ptr.hbm [resolvable:$true] %s117_s21 }
   0xd   :  { %v63_v3 = vsub.f32 %v61_v1, %v62_v2  ;;  %v85_v8 = vshrl.u32 %v84_v5, 7  ;;  %v87_v11 = vand.u32 127, %v84_v5  ;;  %s115_s1 = sshll.u32 %s221_s0, 4  ;;  %s116_s1 = int_to_ptr.vmem [resolvable:$true] %s115_s1 }
   0xf   :  { %v64_v4 = vmul.f32 0.5, %v63_v3  ;;  %v88_v12 = vmul.u32 128, %v85_v8 }
  0x11   :  { %136 = vtanh.f32 %v64_v4  ;;  %v89_v13 = vadd.s32 %v88_v12, %v87_v11 }
  0x13   :  { %vm92_vm0 = vcmp.lt.s32.totalorder %v89_v13, 300  ;;  %v93_v16 = vld [vmem:[#allocation2] sm:$0x7] }
  0x17   :  { %v137_v6 = vpop.eup %136 }
  0x18   :  { %v66_v7 = vmul.f32 0.5, %v137_v6 }
  0x1a   :  { %v67_v9 = vadd.f32 0.5, %v66_v7 }
  0x1c   :  { %v68_v10 = vadd.f32 1e-10, %v67_v9 }
  0x1e   :  { %138 = vlog2.f32 %v68_v10 }
  0x24   :  { %v139_v14 = vpop.eup %138 }
  0x25   :  { %v70_v15 = vmul.f32 0.6931472, %v139_v14 }
  0x27   :  { %v94_v17 = vsel %vm92_vm0, %v70_v15, 0.0 }
  0x28   :  { %v95_v18 = vadd.f32 %v94_v17, %v93_v16 }
  0x2a   :  { %96 = vst [vmem:[#allocation2] sm:$0x7] %v95_v18 }
  0x31   :  { %v100_v19 = vld [vmem:[#allocation2] sm:$0x7] }
  0x32   :  { %v102_v20 = vsel %vm101_vm1, %v100_v19, 0.0 }
  0x33   :  { %v103_v21 = vrot.slane %v102_v20, 4 }
  0x35   :  { %v104_v22 = vadd.f32 %v103_v21, %v102_v20 }
  0x37   :  { %v105_v23 = vrot.slane %v104_v22, 2 }
  0x39   :  { %v106_v24 = vadd.f32 %v105_v23, %v104_v22 }
  0x3b   :  { %v107_v25 = vrot.slane %v106_v24, 1 }
  0x3d   :  { %v108_v26 = vadd.f32 %v107_v25, %v106_v24 }
  0x3f   :  { %109 = vst [vmem:[#allocation8] sm:$0x1] %v108_v26 }
  0x40   :  { %120 = dma.vmem_to_hbm [thread:$0]  %s116_s1, 16, %s118_s21, [#allocation5]  }
  0x41   :  { %216 = dma.done.wait [#allocation5], 16  }
  0x42   :  { %217 = vsyncadd [#allocation5], 4294967280 }
  0x43   :  { %125 = vsyncpa [#allocation4], 1 }
  0x44   :  { %126 = vsyncpa [#allocation7], 1 }
  0x45   :  { %127 = vsyncpa [#allocation5], 1 }

</bundles_post_ra>
